<compile_context>
chip_gen: v7x
topology: tpu7x:2x2x1
jax: 0.10.0
libtpu: 0.0.40
codegen_flags: <defaults>
</compile_context>

<pallas_src>
import functools

import jax
import jax.numpy as jnp
from jax.experimental import pallas as pl
from jax.experimental.pallas import tpu as pltpu

LANE = 128
SUBLANE = 8


def _cdiv(a, b):
    return (a + b - 1) // b


def _round_up(x, m):
    return _cdiv(x, m) * m


def _mlp_kernel(x_ref, w1_ref, b1_ref, w2_ref, b2_ref, w3_ref, b3_ref, out_ref):
    cdtype = w1_ref.dtype
    # fc1 + ReLU  (cast x on the VPU here instead of in the wrapper; MXU dot,
    # f32 accumulate; bias/ReLU in f32)
    h1 = jnp.dot(x_ref[...].astype(cdtype), w1_ref[...],
                 preferred_element_type=jnp.float32)
    h1 = jnp.maximum(h1 + b1_ref[...], 0.0)
    # fc2 + ReLU
    h2 = jnp.dot(h1.astype(cdtype), w2_ref[...],
                 preferred_element_type=jnp.float32)
    h2 = jnp.maximum(h2 + b2_ref[...], 0.0)
    # fc3 (no activation); output block is lane-dense (n_action padded to 128k)
    out = jnp.dot(h2.astype(cdtype), w3_ref[...],
                  preferred_element_type=jnp.float32) + b3_ref[...]
    out_ref[...] = out.astype(out_ref.dtype)


def prepare_params(params, dtype=jnp.bfloat16):
    """One-time layout prep (call when params are created/updated, NOT per forward):
      * transpose weights to (in, out)
      * lane-pad fc1 width 64 -> 128 (w1t cols, b1, w2t rows) with zeros
      * zero-pad fc3 output dim up to a multiple of 128 lanes
      * cast weights to the MXU operand dtype (bf16 default; pass jnp.float32
        for an exact-f32 path). Biases stay f32 (elementwise path is f32).
    """
    n_action = params["w3"].shape[0]
    na_pad = _round_up(n_action, LANE)
    h1_pad = LANE  # fc1 width 64 padded to one full lane group

    w1t = jnp.asarray(params["w1"]).T.astype(dtype)             # (n_state, 64)
    w1t = jnp.pad(w1t, ((0, 0), (0, h1_pad - w1t.shape[1])))    # (n_state, 128)
    w2t = jnp.asarray(params["w2"]).T.astype(dtype)             # (64, 256)
    w2t = jnp.pad(w2t, ((0, h1_pad - w2t.shape[0]), (0, 0)))    # (128, 256)
    w3t = jnp.asarray(params["w3"]).T.astype(dtype)             # (256, n_action)
    w3t = jnp.pad(w3t, ((0, 0), (0, na_pad - n_action)))        # (256, na_pad)

    b1 = jnp.asarray(params["b1"]).reshape(1, -1).astype(jnp.float32)
    b1 = jnp.pad(b1, ((0, 0), (0, h1_pad - b1.shape[1])))       # (1, 128)
    b2 = jnp.asarray(params["b2"]).reshape(1, -1).astype(jnp.float32)  # (1, 256)
    b3 = jnp.asarray(params["b3"]).reshape(1, -1).astype(jnp.float32)
    b3 = jnp.pad(b3, ((0, 0), (0, na_pad - n_action)))          # (1, na_pad)

    return {"w1t": w1t, "b1": b1, "w2t": w2t, "b2": b2, "w3t": w3t, "b3": b3}


@functools.partial(jax.jit, static_argnames=("n_action", "block_b"))
def linear_net_forward(x, prepared, *, n_action, block_b=1024):
    """Forward pass of Linear_Net as a single fused, batch-pipelined Pallas kernel.

    x:        (B, n_state) float32 (kept f32 at the kernel boundary; cast in-kernel)
    prepared: output of prepare_params()
    returns   (B, n_action) float32
    """
    B, n_state = x.shape
    w1t, b1 = prepared["w1t"], prepared["b1"]
    w2t, b2 = prepared["w2t"], prepared["b2"]
    w3t, b3 = prepared["w3t"], prepared["b3"]
    h1_pad = w1t.shape[1]
    na_pad = w3t.shape[1]

    # --- Batch tiling -------------------------------------------------------
    # Few, fat steps (per-step pipeline overhead >> MXU time here), balanced so
    # padding waste stays under one sublane group per step, and >= 2 (even)
    # steps when B is large enough so v7x's second TensorCore has work.
    n_tiles = _cdiv(B, block_b)
    if B >= 2 * SUBLANE:
        n_tiles = max(n_tiles, 2)
    if n_tiles > 1 and n_tiles % 2:
        n_tiles += 1
    tb = _round_up(_cdiv(B, n_tiles), SUBLANE)
    b_pad = tb * n_tiles

    xp = x
    if b_pad != B:
        xp = jnp.pad(xp, ((0, b_pad - B), (0, 0)))

    grid = (n_tiles,)

    flops = 2 * b_pad * (n_state * h1_pad + h1_pad * 256 + 256 * na_pad)
    bytes_accessed = (
        xp.size * xp.dtype.itemsize
        + sum(a.size * a.dtype.itemsize for a in (w1t, b1, w2t, b2, w3t, b3))
        + b_pad * na_pad * 4
    )

    # Weights/biases: full-extent blocks, same block every step -> VMEM-resident.
    resident = lambda a: pl.BlockSpec(a.shape, lambda i: (0, 0))

    out = pl.pallas_call(
        _mlp_kernel,
        out_shape=jax.ShapeDtypeStruct((b_pad, na_pad), jnp.float32),
        grid=grid,
        in_specs=[
            pl.BlockSpec((tb, n_state), lambda i: (i, 0)),   # x: tiled over batch
            resident(w1t), resident(b1),
            resident(w2t), resident(b2),
            resident(w3t), resident(b3),
        ],
        out_specs=pl.BlockSpec((tb, na_pad), lambda i: (i, 0)),
        compiler_params=pltpu.CompilerParams(
            dimension_semantics=("parallel",)),              # 2-TC sharding on v7x
        cost_estimate=pl.CostEstimate(
            flops=flops, transcendentals=0, bytes_accessed=bytes_accessed),
    )(xp, w1t, b1, w2t, b2, w3t, b3)

    return out[:B, :n_action]


def init_params(key, n_state, n_action):
    """Deterministic init mirroring Linear_Net.__init__:
    weights ~ Normal(0, 0.1); biases use PyTorch Linear default
    U(-1/sqrt(fan_in), +1/sqrt(fan_in))."""
    ks = jax.random.split(key, 6)

    def bias(k, fan_in, n_out):
        bound = 1.0 / jnp.sqrt(jnp.float32(fan_in))
        return jax.random.uniform(k, (n_out,), jnp.float32, -bound, bound)

    return {
        "w1": 0.1 * jax.random.normal(ks[0], (64, n_state), jnp.float32),
        "b1": bias(ks[1], n_state, 64),
        "w2": 0.1 * jax.random.normal(ks[2], (256, 64), jnp.float32),
        "b2": bias(ks[3], 64, 256),
        "w3": 0.1 * jax.random.normal(ks[4], (n_action, 256), jnp.float32),
        "b3": bias(ks[5], 256, n_action),
    }


if __name__ == "__main__":
    n_state, n_action, batch = 8, 4, 2

    key = jax.random.PRNGKey(0)
    pkey, xkey = jax.random.split(key)
    params = init_params(pkey, n_state, n_action)
    x = jax.random.normal(xkey, (batch, n_state), jnp.float32)

    # Reference in plain JAX (same math as the PyTorch module).
    h1 = jnp.maximum(x @ params["w1"].T + params["b1"], 0.0)
    h2 = jnp.maximum(h1 @ params["w2"].T + params["b2"], 0.0)
    ref = h2 @ params["w3"].T + params["b3"]

    # Exact f32-operand path: tight tolerance.
    prepared_f32 = prepare_params(params, dtype=jnp.float32)
    out_f32 = jax.block_until_ready(
        linear_net_forward(x, prepared_f32, n_action=n_action))
    assert out_f32.shape == (batch, n_action)
    assert jnp.allclose(out_f32, ref, atol=1e-4, rtol=1e-4)

    # Default bf16-operand path (f32 accumulation): loose tolerance.
    prepared_bf16 = prepare_params(params)  # bf16 weights, one-time layout prep
    out_bf16 = jax.block_until_ready(
        linear_net_forward(x, prepared_bf16, n_action=n_action))
    assert out_bf16.shape == (batch, n_action)
    assert jnp.allclose(out_bf16, ref, atol=3e-2, rtol=3e-2)

    # Larger batch exercises the multi-step (megacore-friendly) grid path.
    xb = jax.random.normal(jax.random.PRNGKey(1), (300, n_state), jnp.float32)
    h1b = jnp.maximum(xb @ params["w1"].T + params["b1"], 0.0)
    h2b = jnp.maximum(h1b @ params["w2"].T + params["b2"], 0.0)
    refb = h2b @ params["w3"].T + params["b3"]
    outb = jax.block_until_ready(
        linear_net_forward(xb, prepared_f32, n_action=n_action))
    assert outb.shape == (300, n_action)
    assert jnp.allclose(outb, refb, atol=1e-4, rtol=1e-4)

    print("KERNEL_OK")
</pallas_src>

<mosaic_0001>
module attributes {stable_mosaic.version = 11 : i64} {
  func.func @_mlp_kernel(%arg0: i32, %arg1: memref<8x8xf32, #tpu.memory_space<vmem>>, %arg2: memref<8x128xf32, #tpu.memory_space<vmem>>, %arg3: memref<1x128xf32, #tpu.memory_space<vmem>>, %arg4: memref<128x256xf32, #tpu.memory_space<vmem>>, %arg5: memref<1x256xf32, #tpu.memory_space<vmem>>, %arg6: memref<256x128xf32, #tpu.memory_space<vmem>>, %arg7: memref<1x128xf32, #tpu.memory_space<vmem>>, %arg8: memref<8x128xf32, #tpu.memory_space<vmem>>) attributes {dimension_semantics = [#tpu.dimension_semantics<parallel>], iteration_bounds = array<i64: 1>, scalar_prefetch = 0 : i64, scratch_operands = 0 : i64, tpu.core_type = #tpu.core_type<tc>, window_params = [{transform_indices = @transform_0, window_bounds = array<i64: 8, 8>}, {pipeline_mode = #tpu.pipeline_mode<synchronous>, transform_indices = @transform_1, window_bounds = array<i64: 8, 128>}, {pipeline_mode = #tpu.pipeline_mode<synchronous>, transform_indices = @transform_2, window_bounds = array<i64: 1, 128>}, {pipeline_mode = #tpu.pipeline_mode<synchronous>, transform_indices = @transform_3, window_bounds = array<i64: 128, 256>}, {pipeline_mode = #tpu.pipeline_mode<synchronous>, transform_indices = @transform_4, window_bounds = array<i64: 1, 256>}, {pipeline_mode = #tpu.pipeline_mode<synchronous>, transform_indices = @transform_5, window_bounds = array<i64: 256, 128>}, {pipeline_mode = #tpu.pipeline_mode<synchronous>, transform_indices = @transform_6, window_bounds = array<i64: 1, 128>}, {transform_indices = @transform_7, window_bounds = array<i64: 8, 128>}]} {
    %c0 = arith.constant 0 : index
    %c0_0 = arith.constant 0 : index
    %0 = vector.load %arg1[%c0, %c0_0] : memref<8x8xf32, #tpu.memory_space<vmem>>, vector<8x8xf32>
    %c0_1 = arith.constant 0 : index
    %c0_2 = arith.constant 0 : index
    %1 = vector.load %arg2[%c0_1, %c0_2] : memref<8x128xf32, #tpu.memory_space<vmem>>, vector<8x128xf32>
    %cst = arith.constant dense<0.000000e+00> : vector<8x128xf32>
    %2 = tpu.matmul %0, %1, %cst {dimension_numbers = #tpu.dot_dimension_numbers<[1], [0], [0], [1], [0, 0, 1, 1], [], []>} : vector<8x8xf32>, vector<8x128xf32>, vector<8x128xf32> -> vector<8x128xf32>
    %c0_3 = arith.constant 0 : index
    %c0_4 = arith.constant 0 : index
    %3 = vector.load %arg3[%c0_3, %c0_4] : memref<1x128xf32, #tpu.memory_space<vmem>>, vector<1x128xf32>
    %4 = vector.broadcast %3 : vector<1x128xf32> to vector<8x128xf32>
    %5 = arith.addf %2, %4 : vector<8x128xf32>
    %cst_5 = arith.constant 0.000000e+00 : f32
    %6 = vector.broadcast %cst_5 : f32 to vector<8x128xf32>
    %7 = arith.maximumf %5, %6 : vector<8x128xf32>
    %c0_6 = arith.constant 0 : index
    %c0_7 = arith.constant 0 : index
    %8 = vector.load %arg4[%c0_6, %c0_7] : memref<128x256xf32, #tpu.memory_space<vmem>>, vector<128x256xf32>
    %cst_8 = arith.constant dense<0.000000e+00> : vector<8x256xf32>
    %9 = tpu.matmul %7, %8, %cst_8 {dimension_numbers = #tpu.dot_dimension_numbers<[1], [0], [0], [1], [0, 0, 1, 1], [], []>} : vector<8x128xf32>, vector<128x256xf32>, vector<8x256xf32> -> vector<8x256xf32>
    %c0_9 = arith.constant 0 : index
    %c0_10 = arith.constant 0 : index
    %10 = vector.load %arg5[%c0_9, %c0_10] : memref<1x256xf32, #tpu.memory_space<vmem>>, vector<1x256xf32>
    %11 = vector.broadcast %10 : vector<1x256xf32> to vector<8x256xf32>
    %12 = arith.addf %9, %11 : vector<8x256xf32>
    %cst_11 = arith.constant 0.000000e+00 : f32
    %13 = vector.broadcast %cst_11 : f32 to vector<8x256xf32>
    %14 = arith.maximumf %12, %13 : vector<8x256xf32>
    %c0_12 = arith.constant 0 : index
    %c0_13 = arith.constant 0 : index
    %15 = vector.load %arg6[%c0_12, %c0_13] : memref<256x128xf32, #tpu.memory_space<vmem>>, vector<256x128xf32>
    %cst_14 = arith.constant dense<0.000000e+00> : vector<8x128xf32>
    %16 = tpu.matmul %14, %15, %cst_14 {dimension_numbers = #tpu.dot_dimension_numbers<[1], [0], [0], [1], [0, 0, 1, 1], [], []>} : vector<8x256xf32>, vector<256x128xf32>, vector<8x128xf32> -> vector<8x128xf32>
    %c0_15 = arith.constant 0 : index
    %c0_16 = arith.constant 0 : index
    %17 = vector.load %arg7[%c0_15, %c0_16] : memref<1x128xf32, #tpu.memory_space<vmem>>, vector<1x128xf32>
    %18 = vector.broadcast %17 : vector<1x128xf32> to vector<8x128xf32>
    %19 = arith.addf %16, %18 : vector<8x128xf32>
    %c0_17 = arith.constant 0 : index
    %c0_18 = arith.constant 0 : index
    %20 = vector.load %arg8[%c0_17, %c0_18] : memref<8x128xf32, #tpu.memory_space<vmem>>, vector<8x128xf32>
    tpu.vector_store %arg8[%c0_17, %c0_18], %19 {strides = array<i32>} : memref<8x128xf32, #tpu.memory_space<vmem>>, vector<8x128xf32>,
    return
  }
  func.func @transform_0(%arg0: i32) -> (i32, i32) {
    %c0_i32 = arith.constant 0 : i32
    %c0_i32_0 = arith.constant 0 : i32
    return %arg0, %c0_i32 : i32, i32
  }
  func.func @transform_1(%arg0: i32) -> (i32, i32) {
    %c0_i32 = arith.constant 0 : i32
    %c0_i32_0 = arith.constant 0 : i32
    %c0_i32_1 = arith.constant 0 : i32
    return %c0_i32, %c0_i32_0 : i32, i32
  }
  func.func @transform_2(%arg0: i32) -> (i32, i32) {
    %c0_i32 = arith.constant 0 : i32
    %c0_i32_0 = arith.constant 0 : i32
    %c0_i32_1 = arith.constant 0 : i32
    return %c0_i32, %c0_i32_0 : i32, i32
  }
  func.func @transform_3(%arg0: i32) -> (i32, i32) {
    %c0_i32 = arith.constant 0 : i32
    %c0_i32_0 = arith.constant 0 : i32
    %c0_i32_1 = arith.constant 0 : i32
    return %c0_i32, %c0_i32_0 : i32, i32
  }
  func.func @transform_4(%arg0: i32) -> (i32, i32) {
    %c0_i32 = arith.constant 0 : i32
    %c0_i32_0 = arith.constant 0 : i32
    %c0_i32_1 = arith.constant 0 : i32
    return %c0_i32, %c0_i32_0 : i32, i32
  }
  func.func @transform_5(%arg0: i32) -> (i32, i32) {
    %c0_i32 = arith.constant 0 : i32
    %c0_i32_0 = arith.constant 0 : i32
    %c0_i32_1 = arith.constant 0 : i32
    return %c0_i32, %c0_i32_0 : i32, i32
  }
  func.func @transform_6(%arg0: i32) -> (i32, i32) {
    %c0_i32 = arith.constant 0 : i32
    %c0_i32_0 = arith.constant 0 : i32
    %c0_i32_1 = arith.constant 0 : i32
    return %c0_i32, %c0_i32_0 : i32, i32
  }
  func.func @transform_7(%arg0: i32) -> (i32, i32) {
    %c0_i32 = arith.constant 0 : i32
    %c0_i32_0 = arith.constant 0 : i32
    return %arg0, %c0_i32 : i32, i32
  }
}

</mosaic_0001>

<bundles_post_ra>
// kernel: linear_net_forward.1
= control target key start
LH: loop header
LB: loop body
LE: loop exit
PB: predicated region body
PF: predicated region fallthrough
CT: control target
= control target key end

     0   :  { %12 = vsyncpa [#allocation3], 0  ;;  %s626_s0 = inlined_call_operand.vmem [shape: f32[8,8], index: 0, kind: input, shape index: {}]   ;;  %s627_s1 = inlined_call_operand.vmem [shape: f32[8,128], index: 1, kind: input, shape index: {}]   ;;  %s628_s2 = inlined_call_operand.vmem [shape: f32[1,128], index: 2, kind: input, shape index: {}]   ;;  %s629_s3 = inlined_call_operand.hbm [shape: f32[128,256], index: 3, kind: input, shape index: {}]   ;;  %s630_s4 = inlined_call_operand.vmem [shape: f32[1,256], index: 4, kind: input, shape index: {}]   ;;  %s631_s5 = inlined_call_operand.hbm [shape: f32[256,128], index: 5, kind: input, shape index: {}]   ;;  %s632_s6 = inlined_call_operand.vmem [shape: f32[1,128], index: 6, kind: input, shape index: {}]   ;;  %s633_s7 = inlined_call_operand.vmem [shape: f32[8,128], index: 7, kind: output, shape index: {}]  }
   0x1   :  { %13 = vsyncpa [#allocation5], 0  ;;  %s536_s24 = smov [#allocation2]   ;;  %s488_s28 = scalar_lea.hbm %s629_s3, 4096 }
   0x2   :  { %s25_s25 = sshll.u32 %s536_s24, 4  ;;  %p489_p0 = scmp.ne.s32.totalorder %s629_s3, %s488_s28  ;;  %s26_s25 = int_to_ptr.vmem [resolvable:$true] %s25_s25 }
   0x3   :  { %p492_p1 = scmp.lt.u32.totalorder %s488_s28, %s629_s3 }
   0x5   :  { %p494_p2 = pnand %p492_p1, %p489_p0 }
   0x7   :  { %497 = shalt.err (!%p494_p2)
}
   0x8   :  { %s498_s10 = scalar_lea.vmem %s26_s25, 4096  ;;  %p503_p4 = scmp.lt.s32.totalorder %s26_s25, %s26_s25 }
   0x9   :  { %p499_p3 = scmp.ne.s32.totalorder %s26_s25, %s498_s10  ;;  %p504_p5 = scmp.lt.s32.totalorder %s498_s10, %s498_s10 }
   0xb   :  { %p505_p6 = por %p504_p5, %p503_p4 }
   0xd   :  { %p506_p7 = pnand %p505_p6, %p499_p3 }
   0xf   :  { %509 = shalt.err (!%p506_p7)
}
  0x10   :  { %s537_s11 = smov 256   ;;  %s538_s12 = smov 16  }
  0x11   :  { %31 = dma.hbm_to_vmem [thread:$0]  %s629_s3, 4096, %s26_s25, [#allocation3], %s537_s11, %s537_s11, %s538_s12  }
  0x12   :  { %s539_s15 = smov [#allocation4]   ;;  %s510_s19 = scalar_lea.hbm %s631_s5, 4096 }
  0x13   :  { %s39_s16 = sshll.u32 %s539_s15, 4  ;;  %p511_p8 = scmp.ne.s32.totalorder %s631_s5, %s510_s19  ;;  %s40_s16 = int_to_ptr.vmem [resolvable:$true] %s39_s16 }
  0x14   :  { %p514_p9 = scmp.lt.u32.totalorder %s510_s19, %s631_s5 }
  0x16   :  { %p516_p10 = pnand %p514_p9, %p511_p8 }
  0x18   :  { %519 = shalt.err (!%p516_p10)
}
  0x19   :  { %s520_s24 = scalar_lea.vmem %s40_s16, 4096  ;;  %p525_p12 = scmp.lt.s32.totalorder %s40_s16, %s40_s16 }
  0x1a   :  { %p521_p11 = scmp.ne.s32.totalorder %s40_s16, %s520_s24  ;;  %p526_p13 = scmp.lt.s32.totalorder %s520_s24, %s520_s24 }
  0x1c   :  { %p527_p0 = por %p526_p13, %p525_p12 }
  0x1e   :  { %p528_p1 = pnand %p527_p0, %p521_p11 }
  0x20   :  { %531 = shalt.err (!%p528_p1)
}
  0x21   :  { %s540_s3 = smov 128   ;;  %s541_s25 = smov 8  }
  0x22   :  { %45 = dma.hbm_to_vmem [thread:$0]  %s631_s5, 4096, %s40_s16, [#allocation5], %s540_s3, %s540_s3, %s541_s25  }
  0x23   :  { %532 = dma.done.wait [#allocation3], 4096  }
  0x24   :  { %533 = vsyncadd [#allocation3], 4294963200 }
  0x25   :  { %534 = dma.done.wait [#allocation5], 4096  }
  0x26   :  { %535 = vsyncadd [#allocation5], 4294963200  ;;  %v542_v0 = vmov 0.0   ;;  %vm543_vm0 = vmmov 0   ;;  %vm63_vm1 = vcmask 64512   ;;  %v55_v1 = vld [vmem:[%s627_s1] sm:$0xff] }
  0x27   :  { %411 = vmatprep.subr.mxu0 %v542_v0  ;;  %413 = vmatprep.mubr.msk.f32.mxu0 %vm543_vm0, %v542_v0  ;;  %v54_v2 = vld [vmem:[%s626_s0] sm:$0xff]  ;;  %v139_v3 = vld [vmem:[#allocation2 + $0x8] sm:$0xff]  ;;  %v141_v4 = vld [vmem:[#allocation2 + $0x18] sm:$0xff] }
  0x28   :  { %246 = vmatprep.mubr.f32.mxu1 %v542_v0  ;;  %412 = vmatpush3.msra.mxu0 %v55_v1  ;;  %v138_v5 = vld [vmem:[#allocation2] sm:$0xff]  ;;  %v140_v6 = vld [vmem:[#allocation2 + $0x10] sm:$0xff]  ;;  %v416_v7 = vpack.c.bf16 %v141_v4, %v139_v3  ;;  %v143_v9 = vld [vmem:[#allocation2 + $0x28] sm:$0xff] }
  0x29   :  { %414 = vmatmul.mubr.msk.f32.vlgmr.msra.gmra.mrb[0].mxu0 %vm63_vm1, %v54_v2  ;;  %v418_v8 = vpack.c.bf16 %v140_v6, %v138_v5  ;;  %v145_v10 = vld [vmem:[#allocation2 + $0x38] sm:$0xff]  ;;  %v142_v11 = vld [vmem:[#allocation2 + $0x20] sm:$0xff]  ;;  %v144_v13 = vld [vmem:[#allocation2 + $0x30] sm:$0xff] }
  0x2a   :  { %v420_v12 = vpack.c.bf16 %v145_v10, %v143_v9  ;;  %v147_v14 = vld [vmem:[#allocation2 + $0x48] sm:$0xff]  ;;  %v149_v15 = vld [vmem:[#allocation2 + $0x58] sm:$0xff]  ;;  %417 = vmatprep.subr.bf16.mxu1 %v416_v7  ;;  %v422_v16 = vpack.c.bf16 %v144_v13, %v142_v11  ;;  %v146_v18 = vld [vmem:[#allocation2 + $0x40] sm:$0xff] }
  0x2b   :  { %419 = vmatpush1.bf16.msra.mxu1 %v418_v8  ;;  %v424_v17 = vpack.c.bf16 %v149_v15, %v147_v14  ;;  %v148_v19 = vld [vmem:[#allocation2 + $0x50] sm:$0xff]  ;;  %v151_v20 = vld [vmem:[#allocation2 + $0x68] sm:$0xff]  ;;  %v153_v21 = vld [vmem:[#allocation2 + $0x78] sm:$0xff] }
  0x2c   :  { %421 = vmatprep.subr.bf16.mxu1 %v420_v12  ;;  %v426_v22 = vpack.c.bf16 %v148_v19, %v146_v18  ;;  %v428_v23 = vpack.c.bf16 %v153_v21, %v151_v20  ;;  %v150_v24 = vld [vmem:[#allocation2 + $0x60] sm:$0xff]  ;;  %v152_v25 = vld [vmem:[#allocation2 + $0x70] sm:$0xff]  ;;  %v155_v26 = vld [vmem:[#allocation2 + $0x88] sm:$0xff] }
  0x2d   :  { %v157_v27 = vld [vmem:[#allocation2 + $0x98] sm:$0xff]  ;;  %v430_v28 = vpack.c.bf16 %v152_v25, %v150_v24  ;;  %v154_v30 = vld [vmem:[#allocation2 + $0x80] sm:$0xff]  ;;  %v156_v31 = vld [vmem:[#allocation2 + $0x90] sm:$0xff] }
  0x2e   :  { %v432_v29 = vpack.c.bf16 %v157_v27, %v155_v26  ;;  %v159_v32 = vld [vmem:[#allocation2 + $0xa8] sm:$0xff]  ;;  %v161_v33 = vld [vmem:[#allocation2 + $0xb8] sm:$0xff]  ;;  %v434_v34 = vpack.c.bf16 %v156_v31, %v154_v30  ;;  %v158_v36 = vld [vmem:[#allocation2 + $0xa0] sm:$0xff] }
  0x2f   :  { %423 = vmatpush1.bf16.msra.mxu1 %v422_v16  ;;  %v436_v35 = vpack.c.bf16 %v161_v33, %v159_v32  ;;  %v160_v37 = vld [vmem:[#allocation2 + $0xb0] sm:$0xff]  ;;  %v163_v38 = vld [vmem:[#allocation2 + $0xc8] sm:$0xff]  ;;  %v165_v39 = vld [vmem:[#allocation2 + $0xd8] sm:$0xff] }
  0x30   :  { %425 = vmatprep.subr.bf16.mxu1 %v424_v17  ;;  %v438_v40 = vpack.c.bf16 %v160_v37, %v158_v36  ;;  %v440_v41 = vpack.c.bf16 %v165_v39, %v163_v38  ;;  %v162_v42 = vld [vmem:[#allocation2 + $0xc0] sm:$0xff]  ;;  %v164_v43 = vld [vmem:[#allocation2 + $0xd0] sm:$0xff]  ;;  %v167_v45 = vld [vmem:[#allocation2 + $0xe8] sm:$0xff] }
  0x31   :  { %v442_v44 = vpack.c.bf16 %v164_v43, %v162_v42  ;;  %v169_v46 = vld [vmem:[#allocation2 + $0xf8] sm:$0xff]  ;;  %v166_v48 = vld [vmem:[#allocation2 + $0xe0] sm:$0xff]  ;;  %v168_v49 = vld [vmem:[#allocation2 + $0xf0] sm:$0xff] }
  0x32   :  { %v444_v47 = vpack.c.bf16 %v169_v46, %v167_v45  ;;  %v446_v50 = vpack.c.bf16 %v168_v49, %v166_v48  ;;  %v271_v51 = vld [vmem:[#allocation4 + $0x80] sm:$0xff]  ;;  %v272_v52 = vld [vmem:[#allocation4 + $0x88] sm:$0xff]  ;;  %v273_v56 = vld [vmem:[#allocation4 + $0x90] sm:$0xff] }
  0x33   :  { %427 = vmatpush1.bf16.msra.mxu1 %v426_v22  ;;  %v255_v53 = vld [vmem:[#allocation4] sm:$0xff]  ;;  %v448_v54 = vpack.c.bf16 %v272_v52, %v271_v51  ;;  %v256_v55 = vld [vmem:[#allocation4 + $0x8] sm:$0xff]  ;;  %v274_v57 = vld [vmem:[#allocation4 + $0x98] sm:$0xff] }
  0x34   :  { %429 = vmatprep.subr.bf16.mxu1 %v428_v23  ;;  %v450_v58 = vpack.c.bf16 %v256_v55, %v255_v53  ;;  %v452_v59 = vpack.c.bf16 %v274_v57, %v273_v56  ;;  %v257_v60 = vld [vmem:[#allocation4 + $0x10] sm:$0xff]  ;;  %v258_v61 = vld [vmem:[#allocation4 + $0x18] sm:$0xff]  ;;  %v275_v62 = vld [vmem:[#allocation4 + $0xa0] sm:$0xff] }
  0x35   :  { %449 = vmatprep.subr.bf16.mxu0 %v448_v54  ;;  %v276_v63 = vld [vmem:[#allocation4 + $0xa8] sm:$0xff]  ;;  %v454_v0 = vpack.c.bf16 %v258_v61, %v257_v60  ;;  %v259_v2 = vld [vmem:[#allocation4 + $0x20] sm:$0xff]  ;;  %v277_v4 = vld [vmem:[#allocation4 + $0xb0] sm:$0xff] }
  0x36   :  { %451 = vmatpush3.bf16.msra.mxu0 %v450_v58  ;;  %v456_v1 = vpack.c.bf16 %v276_v63, %v275_v62  ;;  %v260_v3 = vld [vmem:[#allocation4 + $0x28] sm:$0xff]  ;;  %v278_v5 = vld [vmem:[#allocation4 + $0xb8] sm:$0xff]  ;;  %v261_v8 = vld [vmem:[#allocation4 + $0x30] sm:$0xff] }
  0x37   :  { %431 = vmatpush1.bf16.msra.mxu1 %v430_v28  ;;  %453 = vmatprep.subr.bf16.mxu0 %v452_v59  ;;  %v458_v6 = vpack.c.bf16 %v260_v3, %v259_v2  ;;  %v460_v7 = vpack.c.bf16 %v278_v5, %v277_v4  ;;  %v262_v9 = vld [vmem:[#allocation4 + $0x38] sm:$0xff]  ;;  %v279_v10 = vld [vmem:[#allocation4 + $0xc0] sm:$0xff]  ;;  %v280_v11 = vld [vmem:[#allocation4 + $0xc8] sm:$0xff] }
  0x38   :  { %433 = vmatprep.subr.bf16.mxu1 %v432_v29  ;;  %v462_v12 = vpack.c.bf16 %v262_v9, %v261_v8  ;;  %v464_v13 = vpack.c.bf16 %v280_v11, %v279_v10  ;;  %v263_v14 = vld [vmem:[#allocation4 + $0x40] sm:$0xff]  ;;  %v264_v15 = vld [vmem:[#allocation4 + $0x48] sm:$0xff]  ;;  %v281_v16 = vld [vmem:[#allocation4 + $0xd0] sm:$0xff] }
  0x39   :  { %v282_v17 = vld [vmem:[#allocation4 + $0xd8] sm:$0xff]  ;;  %v466_v18 = vpack.c.bf16 %v264_v15, %v263_v14  ;;  %v265_v20 = vld [vmem:[#allocation4 + $0x50] sm:$0xff]  ;;  %v283_v22 = vld [vmem:[#allocation4 + $0xe0] sm:$0xff] }
  0x3a   :  { %455 = vmatpush3.bf16.msra.mxu0 %v454_v0  ;;  %v468_v19 = vpack.c.bf16 %v282_v17, %v281_v16  ;;  %v266_v21 = vld [vmem:[#allocation4 + $0x58] sm:$0xff]  ;;  %v284_v23 = vld [vmem:[#allocation4 + $0xe8] sm:$0xff]  ;;  %v371_v26 = vld [vmem:[%s628_s2] ss:$0 sm:$0xff] }
  0x3b   :  { %435 = vmatpush1.bf16.msra.mxu1 %v434_v34  ;;  %457 = vmatprep.subr.bf16.mxu0 %v456_v1  ;;  %v470_v24 = vpack.c.bf16 %v266_v21, %v265_v20  ;;  %v472_v25 = vpack.c.bf16 %v284_v23, %v283_v22  ;;  %v267_v31 = vld [vmem:[#allocation4 + $0x60] sm:$0xff]  ;;  %v268_v32 = vld [vmem:[#allocation4 + $0x68] sm:$0xff]  ;;  %v285_v34 = vld [vmem:[#allocation4 + $0xf0] sm:$0xff] }
  0x3c   :  { %437 = vmatprep.subr.bf16.mxu1 %v436_v35  ;;  %v474_v33 = vpack.c.bf16 %v268_v32, %v267_v31  ;;  %v286_v35 = vld [vmem:[#allocation4 + $0xf8] sm:$0xff]  ;;  %v269_v37 = vld [vmem:[#allocation4 + $0x70] sm:$0xff]  ;;  %v170_v43 = vld [vmem:[%s630_s4] sm:$0x3] }
  0x3d   :  { %v476_v36 = vpack.c.bf16 %v286_v35, %v285_v34  ;;  %v270_v38 = vld [vmem:[#allocation4 + $0x78] sm:$0xff]  ;;  %v373_v54 = vld [vmem:[%s632_s6] ss:$0 sm:$0xff] }
  0x3e   :  { %459 = vmatpush3.bf16.msra.mxu0 %v458_v6  ;;  %v478_v39 = vpack.c.bf16 %v270_v38, %v269_v37 }
  0x3f   :  { %439 = vmatpush1.bf16.msra.mxu1 %v438_v40  ;;  %461 = vmatprep.subr.bf16.mxu0 %v460_v7  ;;  %v172_v40 = vlaneseq }
  0x40   :  { %441 = vmatprep.subr.bf16.mxu1 %v440_v41 }
  0x41   :  { %v173_v41 = vshrl.u32 %v172_v40, 7 }
  0x42   :  { %463 = vmatpush3.bf16.msra.mxu0 %v462_v12 }
  0x43   :  { %443 = vmatpush1.bf16.msra.mxu1 %v442_v44  ;;  %465 = vmatprep.subr.bf16.mxu0 %v464_v13  ;;  %v174_v42 = vsub.s32 0, %v173_v41  ;;  %v178_v44 = vsub.s32 1, %v173_v41 }
  0x44   :  { %445 = vmatprep.subr.bf16.mxu1 %v444_v47 }
  0x45   :  { %v175_v45 = vrot.slane %v170_v43, %v174_v42  ;;  %v179_v46 = vrot.slane %v170_v43, %v178_v44 }
  0x46   :  { %467 = vmatpush3.bf16.msra.mxu0 %v466_v18 }
  0x47   :  { %447 = vmatpush1.bf16.msra.mxu1 %v446_v50  ;;  %469 = vmatprep.subr.bf16.mxu0 %v468_v19 }
  0x4a   :  { %471 = vmatpush3.bf16.msra.mxu0 %v470_v24 }
  0x4b   :  { %473 = vmatprep.subr.bf16.mxu0 %v472_v25 }
  0x4e   :  { %475 = vmatpush3.bf16.msra.mxu0 %v474_v33 }
  0x4f   :  { %477 = vmatprep.subr.bf16.mxu0 %v476_v36 }
  0x52   :  { %479 = vmatpush3.bf16.msra.mxu0 %v478_v39 }
  0xfc   :  { %v133_v27 = vpop.f32.mrb[0].mxu0 }
  0xfd   :  { %v134_v28 = vadd.f32 %v371_v26, %v133_v27  ;;  %v415_v29 = vpop.f32.mrb[1].mxu0 }
  0xff   :  { %v137_v30 = vmax.f32 %v134_v28, 0.0 }
 0x101   :  { %247 = vmatmul.mubr.f32.vlgmr.msra.gmra.mrb[0].mxu1 %v137_v30 }
 0x1d4   :  { %v248_v47 = vpop.f32.mrb[0].mxu1 }
 0x1d5   :  { %v249_v48 = vadd.f32 %v248_v47, %v175_v45  ;;  %v250_v49 = vpop.f32.mrb[1].mxu1 }
 0x1d6   :  { %v251_v50 = vadd.f32 %v250_v49, %v179_v46 }
 0x1d7   :  { %v253_v52 = vmax.f32 %v249_v48, 0.0 }
 0x1d8   :  { %v254_v51 = vmax.f32 %v251_v50, 0.0 }
 0x1da   :  { %358 = vmatprep.mubr.f32.mxu0 %v254_v51 }
 0x1db   :  { %359 = vmatmul.mubr.f32.vlgmr.msra.gmra.mrb[2].mxu0 %v253_v52 }
 0x2ae   :  { %v408_v53 = vpop.f32.mrb[2].mxu0 }
 0x2af   :  { %v409_v55 = vpop.f32.mrb[3].mxu0 }
 0x2b0   :  { %v410_v56 = vadd.f32 %v409_v55, %v408_v53 }
 0x2b2   :  { %v361_v57 = vadd.f32 %v410_v56, %v373_v54 }
 0x2b4   :  { %364 = vst [vmem:[%s633_s7] sm:$0xff] %v361_v57 }
 0x2b5   :  { %369 = vsyncpa [#allocation3], 1 }
 0x2b6   :  { %370 = vsyncpa [#allocation5], 1 }

</bundles_post_ra>
